<compile_context>
chip_gen: v5e
topology: v5e:2x2
jax: 0.10.0
libtpu: 0.0.40
codegen_flags: <defaults>
</compile_context>

<pallas_src>
import functools

import numpy as np
import jax
import jax.numpy as jnp
from jax.experimental import pallas as pl
from jax.experimental.pallas import tpu as pltpu


# ---------------------------------------------------------------------------
# Kernel (runs once per batch element; grid=(B,) marked "parallel")
# ---------------------------------------------------------------------------
def _wavenet_kernel(dilations, T, C,
                    x_ref,      # (T, C)        bf16  embedded input (batch squeezed)
                    wfg_ref,    # (L, 2C, 2C)   bf16  fused [Wf0|Wg0 ; Wf1|Wg1]
                    bfg_ref,    # (L, 1, 2C)    f32   [b_filter | b_gate]
                    w1x1_ref,   # (L, C, C)     bf16  residual/skip 1x1 conv
                    b1x1_ref,   # (L, 1, C)     f32
                    wpp_ref,    # (2, C, C)     bf16  [W_pre, W_post1]
                    bpp_ref,    # (2, 1, C)     f32   [b_pre, b_post1]
                    wp2_ref,    # (C, binsP)    bf16  W_post2 (lane-padded)
                    bp2_ref,    # (1, binsP)    f32   b_post2 (lane-padded)
                    out_ref,    # (T, binsP)    f32
                    halo_ref):  # (T+8, 2C)     f32   scratch: [shifted | current]
    f32 = jnp.float32
    bf16 = jnp.bfloat16

    def mm(a, w):  # bf16 x bf16 -> f32 accumulate on the MXU
        return jnp.dot(a, w, preferred_element_type=f32)

    x = x_ref[...]                                           # (T, C) bf16

    # pre-process 1x1 conv
    cur = mm(x, wpp_ref[0]) + bpp_ref[0]                     # (T, C) f32
    skip_sum = jnp.zeros_like(cur)

    # Stack of dilated gated residual layers (statically unrolled; 3 layers).
    # Right-aligned fixed-length buffers: head rows (t < cumulative RF) hold
    # bounded garbage that never reaches the final output slice.
    for l, d in enumerate(dilations):
        # Build the fused conv operand [x[t-d] | x[t]] in the halo scratch.
        # Zero-fill of rows t<d is by construction; no cross-batch mixing
        # because the grid iterates over batch.
        halo_ref[0:d, 0:C] = jnp.zeros((d, C), f32)          # causal zero head
        halo_ref[d:d + T, 0:C] = cur                         # shifted tap x[t-d]
        halo_ref[0:T, C:2 * C] = cur                         # current tap x[t]
        xcat = halo_ref[0:T, :].astype(bf16)                 # (T, 2C) aligned load

        # One fused MXU matmul replaces 4 separate 32x32x32 matmuls.
        fg = mm(xcat, wfg_ref[l]) + bfg_ref[l]               # (T, 2C) f32
        f = jnp.tanh(fg[:, :C])                              # filter half (f32, EUP)
        g = jax.nn.sigmoid(fg[:, C:])                        # gate half   (f32, EUP)
        gated = (f * g).astype(bf16)                         # gating in f32, cast for MXU

        skip = mm(gated, w1x1_ref[l]) + b1x1_ref[l]          # (T, C) f32
        cur = cur + skip                                     # residual
        skip_sum = skip_sum + skip

    # post-process: relu -> 1x1 -> relu -> 1x1 (C -> bins_padded)
    y = jnp.maximum(skip_sum, 0.0)
    y = jnp.maximum(mm(y.astype(bf16), wpp_ref[1]) + bpp_ref[1], 0.0)
    y = mm(y.astype(bf16), wp2_ref[...]) + bp2_ref[...]
    out_ref[...] = y                                         # lane-dense full-slab store


# ---------------------------------------------------------------------------
# Parameter packing (host-side, trace-time)
# ---------------------------------------------------------------------------
def pack_params(raw, bins):
    """Pack raw f32 weights into the bf16/f32 operands the kernel takes."""
    bf16 = jnp.bfloat16
    bins_pad = ((bins + 127) // 128) * 128
    # Fused filter/gate weight: rows 0:C multiply the shifted tap (x[t-d]),
    # rows C:2C the current tap (x[t]); cols 0:C = filter, cols C:2C = gate.
    wfg = jnp.concatenate([
        jnp.concatenate([raw["wf0_t"], raw["wg0_t"]], axis=-1),   # (L, C, 2C)
        jnp.concatenate([raw["wf1_t"], raw["wg1_t"]], axis=-1),   # (L, C, 2C)
    ], axis=-2).astype(bf16)                                      # (L, 2C, 2C)
    bfg = jnp.concatenate([raw["bf"], raw["bg"]], axis=-1)[:, None, :]   # (L, 1, 2C)
    w1x1 = raw["w1x1_t"].astype(bf16)                                    # (L, C, C)
    b1x1 = raw["b1x1"][:, None, :]                                       # (L, 1, C)
    wpp = jnp.stack([raw["wpre_t"], raw["wp1_t"]], axis=0).astype(bf16)  # (2, C, C)
    bpp = jnp.stack([raw["bpre"], raw["bp1"]], axis=0)[:, None, :]       # (2, 1, C)
    wp2 = jnp.pad(raw["wp2_t"], ((0, 0), (0, bins_pad - bins))).astype(bf16)  # (C, binsP)
    bp2 = jnp.pad(raw["bp2"], (0, bins_pad - bins))[None, :]             # (1, binsP)
    return dict(wfg=wfg, bfg=bfg, w1x1=w1x1, b1x1=b1x1,
                wpp=wpp, bpp=bpp, wp2=wp2, bp2=bp2, bins_pad=bins_pad)


# ---------------------------------------------------------------------------
# Wrapper
# ---------------------------------------------------------------------------
def wavenet_forward(idx, raw, *, dilations, C, bins):
    """idx: int32 (B, T). Returns (B, bins, T - receptive_field) like PyTorch."""
    B, T = idx.shape
    L = len(dilations)
    rf = sum(dilations)                                      # kernel_size = 2
    L_final = T - rf
    assert L_final > 0, "input shorter than receptive field"
    assert T % 8 == 0, "time length must be sublane-aligned for this demo"

    p = pack_params(raw, bins)
    bins_pad = p["bins_pad"]

    # embedding lookup (gather) is plain-JAX glue; kernel sees (T, C) bf16 blocks
    x = raw["embedding"][idx].astype(jnp.bfloat16)           # (B, T, C)

    def full(arr):   # whole array resident; same block at every grid step
        return pl.BlockSpec(arr.shape, lambda b, _n=arr.ndim: (0,) * _n)

    in_specs = [
        pl.BlockSpec((None, T, C), lambda b: (b, 0, 0)),     # x, batch squeezed
        full(p["wfg"]), full(p["bfg"]), full(p["w1x1"]), full(p["b1x1"]),
        full(p["wpp"]), full(p["bpp"]), full(p["wp2"]), full(p["bp2"]),
    ]
    out_spec = pl.BlockSpec((None, T, bins_pad), lambda b: (b, 0, 0))

    operands = (x, p["wfg"], p["bfg"], p["w1x1"], p["b1x1"],
                p["wpp"], p["bpp"], p["wp2"], p["bp2"])

    # Advisory cost estimate (per-batch x B).
    flops_b = (2 * T * C * C                                  # pre 1x1
               + L * (2 * T * (2 * C) * (2 * C)               # fused fg conv
                      + 2 * T * C * C)                        # skip 1x1
               + 2 * T * C * C                                # post1
               + 2 * T * C * bins_pad)                        # post2
    transcendentals_b = L * T * 2 * C                         # tanh + sigmoid
    bytes_accessed = (sum(int(np.prod(a.shape)) * a.dtype.itemsize for a in operands)
                      + B * T * bins_pad * 4)

    kernel = functools.partial(_wavenet_kernel, tuple(dilations), T, C)

    out = pl.pallas_call(
        kernel,
        grid=(B,),
        in_specs=in_specs,
        out_specs=out_spec,
        out_shape=jax.ShapeDtypeStruct((B, T, bins_pad), jnp.float32),
        scratch_shapes=[pltpu.VMEM((T + 8, 2 * C), jnp.float32)],   # halo scratch
        compiler_params=pltpu.CompilerParams(
            dimension_semantics=("parallel",),                # megacore shard on v7x
            vmem_limit_bytes=32 * 1024 * 1024),
        cost_estimate=pl.CostEstimate(
            flops=int(B * flops_b),
            transcendentals=int(B * transcendentals_b),
            bytes_accessed=int(bytes_accessed)),
    )(*operands)

    out = out[:, T - L_final:, :bins]                        # wrapper-side slice
    return jnp.transpose(out, (0, 2, 1))                     # (B, bins, L_final)


# ---------------------------------------------------------------------------
# Pure-JAX reference (mirrors the PyTorch forward; same bf16 matmul numerics)
# ---------------------------------------------------------------------------
def wavenet_ref(idx, raw, dilations, C, bins):
    bf16 = jnp.bfloat16

    def mm(a, w):
        return jnp.matmul(a.astype(bf16), w.astype(bf16),
                          preferred_element_type=jnp.float32)

    x = raw["embedding"][idx].astype(jnp.float32)            # (B, T, C)
    cur = mm(x, raw["wpre_t"]) + raw["bpre"]
    skips = []
    for l, d in enumerate(dilations):
        L_out = cur.shape[1] - d
        f = jnp.tanh(mm(cur[:, :L_out], raw["wf0_t"][l])
                     + mm(cur[:, d:], raw["wf1_t"][l]) + raw["bf"][l])
        g = jax.nn.sigmoid(mm(cur[:, :L_out], raw["wg0_t"][l])
                           + mm(cur[:, d:], raw["wg1_t"][l]) + raw["bg"][l])
        gated = f * g
        skip = mm(gated, raw["w1x1_t"][l]) + raw["b1x1"][l]
        cur = cur[:, d:] + skip
        skips.append(skip)
    L_final = skips[-1].shape[1]
    s = sum(sk[:, sk.shape[1] - L_final:] for sk in skips)
    y = jax.nn.relu(s)
    y = jax.nn.relu(mm(y, raw["wp1_t"]) + raw["bp1"])
    y = mm(y, raw["wp2_t"]) + raw["bp2"]
    return jnp.transpose(y, (0, 2, 1))


# ---------------------------------------------------------------------------
# Synthetic weights (PyTorch shapes, then pre-transposed channels-last)
# ---------------------------------------------------------------------------
def init_params(key, bins, C, n_layers):
    ks = jax.random.split(key, 11)
    s = 0.2
    embedding = jax.random.normal(ks[0], (bins, C), jnp.float32) * s
    wpre = jax.random.normal(ks[1], (C, C), jnp.float32) * s                 # Conv1d(C,C,1)
    bpre = jax.random.normal(ks[2], (C,), jnp.float32) * s
    wfg = jax.random.normal(ks[3], (n_layers, 2 * C, C, 2), jnp.float32) * s  # Conv1d(C,2C,2,dil)
    bfg = jax.random.normal(ks[4], (n_layers, 2 * C), jnp.float32) * s
    w1x1 = jax.random.normal(ks[5], (n_layers, C, C), jnp.float32) * s
    b1x1 = jax.random.normal(ks[6], (n_layers, C), jnp.float32) * s
    wp1 = jax.random.normal(ks[7], (C, C), jnp.float32) * s
    bp1 = jax.random.normal(ks[8], (C,), jnp.float32) * s
    wp2 = jax.random.normal(ks[9], (bins, C), jnp.float32) * s
    bp2 = jax.random.normal(ks[10], (bins,), jnp.float32) * s
    return dict(
        embedding=embedding,
        wpre_t=wpre.T, bpre=bpre,
        # torch.chunk(fg, 2, dim=1): filter = out channels [:C], gate = [C:]
        wf0_t=jnp.transpose(wfg[:, :C, :, 0], (0, 2, 1)),   # multiplies x[t]
        wf1_t=jnp.transpose(wfg[:, :C, :, 1], (0, 2, 1)),   # multiplies x[t + d]
        wg0_t=jnp.transpose(wfg[:, C:, :, 0], (0, 2, 1)),
        wg1_t=jnp.transpose(wfg[:, C:, :, 1], (0, 2, 1)),
        bf=bfg[:, :C], bg=bfg[:, C:],
        w1x1_t=jnp.transpose(w1x1, (0, 2, 1)), b1x1=b1x1,
        wp1_t=wp1.T, bp1=bp1,
        wp2_t=wp2.T, bp2=bp2,
    )


if __name__ == "__main__":
    # small config consistent with WaveNet(__init__): kernel_size=2, blocks=1
    bins, C, dilation_depth = 64, 32, 3
    dilations = [2 ** i for i in range(dilation_depth)]      # [1, 2, 4], RF = 7
    B, T = 2, 16

    key = jax.random.PRNGKey(0)
    pkey, xkey = jax.random.split(key)
    raw = init_params(pkey, bins, C, len(dilations))
    quantisized_x = jax.random.randint(xkey, (B, T), 0, bins, dtype=jnp.int32)

    out = wavenet_forward(quantisized_x, raw, dilations=dilations, C=C, bins=bins)
    out = jax.block_until_ready(out)                         # (2, 64, 9)

    ref = wavenet_ref(quantisized_x, raw, dilations, C, bins)
    np.testing.assert_allclose(np.asarray(out), np.asarray(ref),
                               rtol=2e-3, atol=2e-3)
    print("KERNEL_OK")
</pallas_src>

<mosaic_0001>
module attributes {stable_mosaic.version = 11 : i64} {
  func.func @_wavenet_kernel(%arg0: i32, %arg1: memref<1x16x32xbf16, #tpu.memory_space<vmem>>, %arg2: memref<3x64x64xbf16, #tpu.memory_space<vmem>>, %arg3: memref<3x1x64xf32, #tpu.memory_space<vmem>>, %arg4: memref<3x32x32xbf16, #tpu.memory_space<vmem>>, %arg5: memref<3x1x32xf32, #tpu.memory_space<vmem>>, %arg6: memref<2x32x32xbf16, #tpu.memory_space<vmem>>, %arg7: memref<2x1x32xf32, #tpu.memory_space<vmem>>, %arg8: memref<32x128xbf16, #tpu.memory_space<vmem>>, %arg9: memref<1x128xf32, #tpu.memory_space<vmem>>, %arg10: memref<1x16x128xf32, #tpu.memory_space<vmem>>, %arg11: memref<24x64xf32, #tpu.memory_space<vmem>>) attributes {dimension_semantics = [#tpu.dimension_semantics<parallel>], iteration_bounds = array<i64: 2>, scalar_prefetch = 0 : i64, scratch_operands = 1 : i64, tpu.core_type = #tpu.core_type<tc>, window_params = [{transform_indices = @transform_0, window_bounds = array<i64: 1, 16, 32>}, {pipeline_mode = #tpu.pipeline_mode<synchronous>, transform_indices = @transform_1, window_bounds = array<i64: 3, 64, 64>}, {pipeline_mode = #tpu.pipeline_mode<synchronous>, transform_indices = @transform_2, window_bounds = array<i64: 3, 1, 64>}, {pipeline_mode = #tpu.pipeline_mode<synchronous>, transform_indices = @transform_3, window_bounds = array<i64: 3, 32, 32>}, {pipeline_mode = #tpu.pipeline_mode<synchronous>, transform_indices = @transform_4, window_bounds = array<i64: 3, 1, 32>}, {pipeline_mode = #tpu.pipeline_mode<synchronous>, transform_indices = @transform_5, window_bounds = array<i64: 2, 32, 32>}, {pipeline_mode = #tpu.pipeline_mode<synchronous>, transform_indices = @transform_6, window_bounds = array<i64: 2, 1, 32>}, {pipeline_mode = #tpu.pipeline_mode<synchronous>, transform_indices = @transform_7, window_bounds = array<i64: 32, 128>}, {pipeline_mode = #tpu.pipeline_mode<synchronous>, transform_indices = @transform_8, window_bounds = array<i64: 1, 128>}, {transform_indices = @transform_9, window_bounds = array<i64: 1, 16, 128>}]} {
    %c0 = arith.constant 0 : index
    %c0_0 = arith.constant 0 : index
    %c0_1 = arith.constant 0 : index
    %0 = vector.load %arg1[%c0, %c0_0, %c0_1] : memref<1x16x32xbf16, #tpu.memory_space<vmem>>, vector<1x16x32xbf16>
    %1 = vector.shape_cast %0 : vector<1x16x32xbf16> to vector<16x32xbf16>
    %c0_2 = arith.constant 0 : index
    %c0_3 = arith.constant 0 : index
    %c0_4 = arith.constant 0 : index
    %2 = vector.load %arg6[%c0_2, %c0_3, %c0_4] : memref<2x32x32xbf16, #tpu.memory_space<vmem>>, vector<1x32x32xbf16>
    %3 = vector.shape_cast %2 : vector<1x32x32xbf16> to vector<32x32xbf16>
    %cst = arith.constant dense<0.000000e+00> : vector<16x32xf32>
    %4 = tpu.matmul %1, %3, %cst {dimension_numbers = #tpu.dot_dimension_numbers<[1], [0], [0], [1], [0, 0, 1, 1], [], []>} : vector<16x32xbf16>, vector<32x32xbf16>, vector<16x32xf32> -> vector<16x32xf32>
    %c0_5 = arith.constant 0 : index
    %c0_6 = arith.constant 0 : index
    %c0_7 = arith.constant 0 : index
    %5 = vector.load %arg7[%c0_5, %c0_6, %c0_7] : memref<2x1x32xf32, #tpu.memory_space<vmem>>, vector<1x1x32xf32>
    %6 = vector.shape_cast %5 : vector<1x1x32xf32> to vector<1x32xf32>
    %7 = vector.broadcast %6 : vector<1x32xf32> to vector<16x32xf32>
    %8 = arith.addf %4, %7 : vector<16x32xf32>
    %cst_8 = arith.constant 0.000000e+00 : f32
    %9 = vector.broadcast %cst_8 : f32 to vector<16x32xf32>
    %cst_9 = arith.constant 0.000000e+00 : f32
    %10 = vector.broadcast %cst_9 : f32 to vector<1x32xf32>
    %c0_10 = arith.constant 0 : index
    %c0_11 = arith.constant 0 : index
    %11 = vector.load %arg11[%c0_10, %c0_11] : memref<24x64xf32, #tpu.memory_space<vmem>>, vector<1x32xf32>
    tpu.vector_store %arg11[%c0_10, %c0_11], %10 {strides = array<i32>} : memref<24x64xf32, #tpu.memory_space<vmem>>, vector<1x32xf32>,
    %c1 = arith.constant 1 : index
    %c0_12 = arith.constant 0 : index
    %12 = vector.load %arg11[%c1, %c0_12] : memref<24x64xf32, #tpu.memory_space<vmem>>, vector<16x32xf32>
    tpu.vector_store %arg11[%c1, %c0_12], %8 {strides = array<i32>} : memref<24x64xf32, #tpu.memory_space<vmem>>, vector<16x32xf32>,
    %c0_13 = arith.constant 0 : index
    %c32 = arith.constant 32 : index
    %13 = vector.load %arg11[%c0_13, %c32] : memref<24x64xf32, #tpu.memory_space<vmem>>, vector<16x32xf32>
    tpu.vector_store %arg11[%c0_13, %c32], %8 {strides = array<i32>} : memref<24x64xf32, #tpu.memory_space<vmem>>, vector<16x32xf32>,
    %c0_14 = arith.constant 0 : index
    %c0_15 = arith.constant 0 : index
    %14 = vector.load %arg11[%c0_14, %c0_15] : memref<24x64xf32, #tpu.memory_space<vmem>>, vector<16x64xf32>
    %15 = arith.truncf %14 : vector<16x64xf32> to vector<16x64xbf16>
    %c0_16 = arith.constant 0 : index
    %c0_17 = arith.constant 0 : index
    %c0_18 = arith.constant 0 : index
    %16 = vector.load %arg2[%c0_16, %c0_17, %c0_18] : memref<3x64x64xbf16, #tpu.memory_space<vmem>>, vector<1x64x64xbf16>
    %17 = vector.shape_cast %16 : vector<1x64x64xbf16> to vector<64x64xbf16>
    %cst_19 = arith.constant dense<0.000000e+00> : vector<16x64xf32>
    %18 = tpu.matmul %15, %17, %cst_19 {dimension_numbers = #tpu.dot_dimension_numbers<[1], [0], [0], [1], [0, 0, 1, 1], [], []>} : vector<16x64xbf16>, vector<64x64xbf16>, vector<16x64xf32> -> vector<16x64xf32>
    %c0_20 = arith.constant 0 : index
    %c0_21 = arith.constant 0 : index
    %c0_22 = arith.constant 0 : index
    %19 = vector.load %arg3[%c0_20, %c0_21, %c0_22] : memref<3x1x64xf32, #tpu.memory_space<vmem>>, vector<1x1x64xf32>
    %20 = vector.shape_cast %19 : vector<1x1x64xf32> to vector<1x64xf32>
    %21 = vector.broadcast %20 : vector<1x64xf32> to vector<16x64xf32>
    %22 = arith.addf %18, %21 : vector<16x64xf32>
    %23 = vector.extract_strided_slice %22 {offsets = [0, 0], sizes = [16, 32], strides = [1, 1]} : vector<16x64xf32> to vector<16x32xf32>
    %24 = math.tanh %23 : vector<16x32xf32>
    %25 = vector.extract_strided_slice %22 {offsets = [0, 32], sizes = [16, 32], strides = [1, 1]} : vector<16x64xf32> to vector<16x32xf32>
    %26 = arith.negf %25 : vector<16x32xf32>
    %27 = math.exp %26 : vector<16x32xf32>
    %cst_23 = arith.constant 1.000000e+00 : f32
    %28 = vector.broadcast %cst_23 : f32 to vector<16x32xf32>
    %29 = arith.addf %28, %27 : vector<16x32xf32>
    %30 = arith.divf %28, %29 : vector<16x32xf32>
    %31 = arith.mulf %24, %30 : vector<16x32xf32>
    %32 = arith.truncf %31 : vector<16x32xf32> to vector<16x32xbf16>
    %c0_24 = arith.constant 0 : index
    %c0_25 = arith.constant 0 : index
    %c0_26 = arith.constant 0 : index
    %33 = vector.load %arg4[%c0_24, %c0_25, %c0_26] : memref<3x32x32xbf16, #tpu.memory_space<vmem>>, vector<1x32x32xbf16>
    %34 = vector.shape_cast %33 : vector<1x32x32xbf16> to vector<32x32xbf16>
    %cst_27 = arith.constant dense<0.000000e+00> : vector<16x32xf32>
    %35 = tpu.matmul %32, %34, %cst_27 {dimension_numbers = #tpu.dot_dimension_numbers<[1], [0], [0], [1], [0, 0, 1, 1], [], []>} : vector<16x32xbf16>, vector<32x32xbf16>, vector<16x32xf32> -> vector<16x32xf32>
    %c0_28 = arith.constant 0 : index
    %c0_29 = arith.constant 0 : index
    %c0_30 = arith.constant 0 : index
    %36 = vector.load %arg5[%c0_28, %c0_29, %c0_30] : memref<3x1x32xf32, #tpu.memory_space<vmem>>, vector<1x1x32xf32>
    %37 = vector.shape_cast %36 : vector<1x1x32xf32> to vector<1x32xf32>
    %38 = vector.broadcast %37 : vector<1x32xf32> to vector<16x32xf32>
    %39 = arith.addf %35, %38 : vector<16x32xf32>
    %40 = arith.addf %8, %39 : vector<16x32xf32>
    %41 = arith.addf %9, %39 : vector<16x32xf32>
    %cst_31 = arith.constant 0.000000e+00 : f32
    %42 = vector.broadcast %cst_31 : f32 to vector<2x32xf32>
    %c0_32 = arith.constant 0 : index
    %c0_33 = arith.constant 0 : index
    %43 = vector.load %arg11[%c0_32, %c0_33] : memref<24x64xf32, #tpu.memory_space<vmem>>, vector<2x32xf32>
    tpu.vector_store %arg11[%c0_32, %c0_33], %42 {strides = array<i32>} : memref<24x64xf32, #tpu.memory_space<vmem>>, vector<2x32xf32>,
    %c2 = arith.constant 2 : index
    %c0_34 = arith.constant 0 : index
    %44 = vector.load %arg11[%c2, %c0_34] : memref<24x64xf32, #tpu.memory_space<vmem>>, vector<16x32xf32>
    tpu.vector_store %arg11[%c2, %c0_34], %40 {strides = array<i32>} : memref<24x64xf32, #tpu.memory_space<vmem>>, vector<16x32xf32>,
    %c0_35 = arith.constant 0 : index
    %c32_36 = arith.constant 32 : index
    %45 = vector.load %arg11[%c0_35, %c32_36] : memref<24x64xf32, #tpu.memory_space<vmem>>, vector<16x32xf32>
    tpu.vector_store %arg11[%c0_35, %c32_36], %40 {strides = array<i32>} : memref<24x64xf32, #tpu.memory_space<vmem>>, vector<16x32xf32>,
    %c0_37 = arith.constant 0 : index
    %c0_38 = arith.constant 0 : index
    %46 = vector.load %arg11[%c0_37, %c0_38] : memref<24x64xf32, #tpu.memory_space<vmem>>, vector<16x64xf32>
    %47 = arith.truncf %46 : vector<16x64xf32> to vector<16x64xbf16>
    %c1_39 = arith.constant 1 : index
    %c0_40 = arith.constant 0 : index
    %c0_41 = arith.constant 0 : index
    %48 = vector.load %arg2[%c1_39, %c0_40, %c0_41] : memref<3x64x64xbf16, #tpu.memory_space<vmem>>, vector<1x64x64xbf16>
    %49 = vector.shape_cast %48 : vector<1x64x64xbf16> to vector<64x64xbf16>
    %cst_42 = arith.constant dense<0.000000e+00> : vector<16x64xf32>
    %50 = tpu.matmul %47, %49, %cst_42 {dimension_numbers = #tpu.dot_dimension_numbers<[1], [0], [0], [1], [0, 0, 1, 1], [], []>} : vector<16x64xbf16>, vector<64x64xbf16>, vector<16x64xf32> -> vector<16x64xf32>
    %c1_43 = arith.constant 1 : index
    %c0_44 = arith.constant 0 : index
    %c0_45 = arith.constant 0 : index
    %51 = vector.load %arg3[%c1_43, %c0_44, %c0_45] : memref<3x1x64xf32, #tpu.memory_space<vmem>>, vector<1x1x64xf32>
    %52 = vector.shape_cast %51 : vector<1x1x64xf32> to vector<1x64xf32>
    %53 = vector.broadcast %52 : vector<1x64xf32> to vector<16x64xf32>
    %54 = arith.addf %50, %53 : vector<16x64xf32>
    %55 = vector.extract_strided_slice %54 {offsets = [0, 0], sizes = [16, 32], strides = [1, 1]} : vector<16x64xf32> to vector<16x32xf32>
    %56 = math.tanh %55 : vector<16x32xf32>
    %57 = vector.extract_strided_slice %54 {offsets = [0, 32], sizes = [16, 32], strides = [1, 1]} : vector<16x64xf32> to vector<16x32xf32>
    %58 = arith.negf %57 : vector<16x32xf32>
    %59 = math.exp %58 : vector<16x32xf32>
    %cst_46 = arith.constant 1.000000e+00 : f32
    %60 = vector.broadcast %cst_46 : f32 to vector<16x32xf32>
    %61 = arith.addf %60, %59 : vector<16x32xf32>
    %62 = arith.divf %60, %61 : vector<16x32xf32>
    %63 = arith.mulf %56, %62 : vector<16x32xf32>
    %64 = arith.truncf %63 : vector<16x32xf32> to vector<16x32xbf16>
    %c1_47 = arith.constant 1 : index
    %c0_48 = arith.constant 0 : index
    %c0_49 = arith.constant 0 : index
    %65 = vector.load %arg4[%c1_47, %c0_48, %c0_49] : memref<3x32x32xbf16, #tpu.memory_space<vmem>>, vector<1x32x32xbf16>
    %66 = vector.shape_cast %65 : vector<1x32x32xbf16> to vector<32x32xbf16>
    %cst_50 = arith.constant dense<0.000000e+00> : vector<16x32xf32>
    %67 = tpu.matmul %64, %66, %cst_50 {dimension_numbers = #tpu.dot_dimension_numbers<[1], [0], [0], [1], [0, 0, 1, 1], [], []>} : vector<16x32xbf16>, vector<32x32xbf16>, vector<16x32xf32> -> vector<16x32xf32>
    %c1_51 = arith.constant 1 : index
    %c0_52 = arith.constant 0 : index
    %c0_53 = arith.constant 0 : index
    %68 = vector.load %arg5[%c1_51, %c0_52, %c0_53] : memref<3x1x32xf32, #tpu.memory_space<vmem>>, vector<1x1x32xf32>
    %69 = vector.shape_cast %68 : vector<1x1x32xf32> to vector<1x32xf32>
    %70 = vector.broadcast %69 : vector<1x32xf32> to vector<16x32xf32>
    %71 = arith.addf %67, %70 : vector<16x32xf32>
    %72 = arith.addf %40, %71 : vector<16x32xf32>
    %73 = arith.addf %41, %71 : vector<16x32xf32>
    %cst_54 = arith.constant 0.000000e+00 : f32
    %74 = vector.broadcast %cst_54 : f32 to vector<4x32xf32>
    %c0_55 = arith.constant 0 : index
    %c0_56 = arith.constant 0 : index
    %75 = vector.load %arg11[%c0_55, %c0_56] : memref<24x64xf32, #tpu.memory_space<vmem>>, vector<4x32xf32>
    tpu.vector_store %arg11[%c0_55, %c0_56], %74 {strides = array<i32>} : memref<24x64xf32, #tpu.memory_space<vmem>>, vector<4x32xf32>,
    %c4 = arith.constant 4 : index
    %c0_57 = arith.constant 0 : index
    %76 = vector.load %arg11[%c4, %c0_57] : memref<24x64xf32, #tpu.memory_space<vmem>>, vector<16x32xf32>
    tpu.vector_store %arg11[%c4, %c0_57], %72 {strides = array<i32>} : memref<24x64xf32, #tpu.memory_space<vmem>>, vector<16x32xf32>,
    %c0_58 = arith.constant 0 : index
    %c32_59 = arith.constant 32 : index
    %77 = vector.load %arg11[%c0_58, %c32_59] : memref<24x64xf32, #tpu.memory_space<vmem>>, vector<16x32xf32>
    tpu.vector_store %arg11[%c0_58, %c32_59], %72 {strides = array<i32>} : memref<24x64xf32, #tpu.memory_space<vmem>>, vector<16x32xf32>,
    %c0_60 = arith.constant 0 : index
    %c0_61 = arith.constant 0 : index
    %78 = vector.load %arg11[%c0_60, %c0_61] : memref<24x64xf32, #tpu.memory_space<vmem>>, vector<16x64xf32>
    %79 = arith.truncf %78 : vector<16x64xf32> to vector<16x64xbf16>
    %c2_62 = arith.constant 2 : index
    %c0_63 = arith.constant 0 : index
    %c0_64 = arith.constant 0 : index
    %80 = vector.load %arg2[%c2_62, %c0_63, %c0_64] : memref<3x64x64xbf16, #tpu.memory_space<vmem>>, vector<1x64x64xbf16>
    %81 = vector.shape_cast %80 : vector<1x64x64xbf16> to vector<64x64xbf16>
    %cst_65 = arith.constant dense<0.000000e+00> : vector<16x64xf32>
    %82 = tpu.matmul %79, %81, %cst_65 {dimension_numbers = #tpu.dot_dimension_numbers<[1], [0], [0], [1], [0, 0, 1, 1], [], []>} : vector<16x64xbf16>, vector<64x64xbf16>, vector<16x64xf32> -> vector<16x64xf32>
    %c2_66 = arith.constant 2 : index
    %c0_67 = arith.constant 0 : index
    %c0_68 = arith.constant 0 : index
    %83 = vector.load %arg3[%c2_66, %c0_67, %c0_68] : memref<3x1x64xf32, #tpu.memory_space<vmem>>, vector<1x1x64xf32>
    %84 = vector.shape_cast %83 : vector<1x1x64xf32> to vector<1x64xf32>
    %85 = vector.broadcast %84 : vector<1x64xf32> to vector<16x64xf32>
    %86 = arith.addf %82, %85 : vector<16x64xf32>
    %87 = vector.extract_strided_slice %86 {offsets = [0, 0], sizes = [16, 32], strides = [1, 1]} : vector<16x64xf32> to vector<16x32xf32>
    %88 = math.tanh %87 : vector<16x32xf32>
    %89 = vector.extract_strided_slice %86 {offsets = [0, 32], sizes = [16, 32], strides = [1, 1]} : vector<16x64xf32> to vector<16x32xf32>
    %90 = arith.negf %89 : vector<16x32xf32>
    %91 = math.exp %90 : vector<16x32xf32>
    %cst_69 = arith.constant 1.000000e+00 : f32
    %92 = vector.broadcast %cst_69 : f32 to vector<16x32xf32>
    %93 = arith.addf %92, %91 : vector<16x32xf32>
    %94 = arith.divf %92, %93 : vector<16x32xf32>
    %95 = arith.mulf %88, %94 : vector<16x32xf32>
    %96 = arith.truncf %95 : vector<16x32xf32> to vector<16x32xbf16>
    %c2_70 = arith.constant 2 : index
    %c0_71 = arith.constant 0 : index
    %c0_72 = arith.constant 0 : index
    %97 = vector.load %arg4[%c2_70, %c0_71, %c0_72] : memref<3x32x32xbf16, #tpu.memory_space<vmem>>, vector<1x32x32xbf16>
    %98 = vector.shape_cast %97 : vector<1x32x32xbf16> to vector<32x32xbf16>
    %cst_73 = arith.constant dense<0.000000e+00> : vector<16x32xf32>
    %99 = tpu.matmul %96, %98, %cst_73 {dimension_numbers = #tpu.dot_dimension_numbers<[1], [0], [0], [1], [0, 0, 1, 1], [], []>} : vector<16x32xbf16>, vector<32x32xbf16>, vector<16x32xf32> -> vector<16x32xf32>
    %c2_74 = arith.constant 2 : index
    %c0_75 = arith.constant 0 : index
    %c0_76 = arith.constant 0 : index
    %100 = vector.load %arg5[%c2_74, %c0_75, %c0_76] : memref<3x1x32xf32, #tpu.memory_space<vmem>>, vector<1x1x32xf32>
    %101 = vector.shape_cast %100 : vector<1x1x32xf32> to vector<1x32xf32>
    %102 = vector.broadcast %101 : vector<1x32xf32> to vector<16x32xf32>
    %103 = arith.addf %99, %102 : vector<16x32xf32>
    %104 = arith.addf %73, %103 : vector<16x32xf32>
    %cst_77 = arith.constant 0.000000e+00 : f32
    %105 = vector.broadcast %cst_77 : f32 to vector<16x32xf32>
    %106 = arith.maximumf %104, %105 : vector<16x32xf32>
    %107 = arith.truncf %106 : vector<16x32xf32> to vector<16x32xbf16>
    %c1_78 = arith.constant 1 : index
    %c0_79 = arith.constant 0 : index
    %c0_80 = arith.constant 0 : index
    %108 = vector.load %arg6[%c1_78, %c0_79, %c0_80] : memref<2x32x32xbf16, #tpu.memory_space<vmem>>, vector<1x32x32xbf16>
    %109 = vector.shape_cast %108 : vector<1x32x32xbf16> to vector<32x32xbf16>
    %cst_81 = arith.constant dense<0.000000e+00> : vector<16x32xf32>
    %110 = tpu.matmul %107, %109, %cst_81 {dimension_numbers = #tpu.dot_dimension_numbers<[1], [0], [0], [1], [0, 0, 1, 1], [], []>} : vector<16x32xbf16>, vector<32x32xbf16>, vector<16x32xf32> -> vector<16x32xf32>
    %c1_82 = arith.constant 1 : index
    %c0_83 = arith.constant 0 : index
    %c0_84 = arith.constant 0 : index
    %111 = vector.load %arg7[%c1_82, %c0_83, %c0_84] : memref<2x1x32xf32, #tpu.memory_space<vmem>>, vector<1x1x32xf32>
    %112 = vector.shape_cast %111 : vector<1x1x32xf32> to vector<1x32xf32>
    %113 = vector.broadcast %112 : vector<1x32xf32> to vector<16x32xf32>
    %114 = arith.addf %110, %113 : vector<16x32xf32>
    %cst_85 = arith.constant 0.000000e+00 : f32
    %115 = vector.broadcast %cst_85 : f32 to vector<16x32xf32>
    %116 = arith.maximumf %114, %115 : vector<16x32xf32>
    %117 = arith.truncf %116 : vector<16x32xf32> to vector<16x32xbf16>
    %c0_86 = arith.constant 0 : index
    %c0_87 = arith.constant 0 : index
    %118 = vector.load %arg8[%c0_86, %c0_87] : memref<32x128xbf16, #tpu.memory_space<vmem>>, vector<32x128xbf16>
    %cst_88 = arith.constant dense<0.000000e+00> : vector<16x128xf32>
    %119 = tpu.matmul %117, %118, %cst_88 {dimension_numbers = #tpu.dot_dimension_numbers<[1], [0], [0], [1], [0, 0, 1, 1], [], []>} : vector<16x32xbf16>, vector<32x128xbf16>, vector<16x128xf32> -> vector<16x128xf32>
    %c0_89 = arith.constant 0 : index
    %c0_90 = arith.constant 0 : index
    %120 = vector.load %arg9[%c0_89, %c0_90] : memref<1x128xf32, #tpu.memory_space<vmem>>, vector<1x128xf32>
    %121 = vector.broadcast %120 : vector<1x128xf32> to vector<16x128xf32>
    %122 = arith.addf %119, %121 : vector<16x128xf32>
    %c0_91 = arith.constant 0 : index
    %c0_92 = arith.constant 0 : index
    %c0_93 = arith.constant 0 : index
    %123 = vector.load %arg10[%c0_91, %c0_92, %c0_93] : memref<1x16x128xf32, #tpu.memory_space<vmem>>, vector<1x16x128xf32>
    %124 = vector.shape_cast %123 : vector<1x16x128xf32> to vector<16x128xf32>
    %125 = vector.shape_cast %122 : vector<16x128xf32> to vector<1x16x128xf32>
    tpu.vector_store %arg10[%c0_91, %c0_92, %c0_93], %125 {strides = array<i32>} : memref<1x16x128xf32, #tpu.memory_space<vmem>>, vector<1x16x128xf32>,
    return
  }
  func.func @transform_0(%arg0: i32) -> (i32, i32, i32) {
    %c0_i32 = arith.constant 0 : i32
    %c0_i32_0 = arith.constant 0 : i32
    %c0_i32_1 = arith.constant 0 : i32
    return %arg0, %c0_i32, %c0_i32_0 : i32, i32, i32
  }
  func.func @transform_1(%arg0: i32) -> (i32, i32, i32) {
    %c0_i32 = arith.constant 0 : i32
    %c0_i32_0 = arith.constant 0 : i32
    %c0_i32_1 = arith.constant 0 : i32
    %c0_i32_2 = arith.constant 0 : i32
    return %c0_i32, %c0_i32_0, %c0_i32_1 : i32, i32, i32
  }
  func.func @transform_2(%arg0: i32) -> (i32, i32, i32) {
    %c0_i32 = arith.constant 0 : i32
    %c0_i32_0 = arith.constant 0 : i32
    %c0_i32_1 = arith.constant 0 : i32
    %c0_i32_2 = arith.constant 0 : i32
    return %c0_i32, %c0_i32_0, %c0_i32_1 : i32, i32, i32
  }
  func.func @transform_3(%arg0: i32) -> (i32, i32, i32) {
    %c0_i32 = arith.constant 0 : i32
    %c0_i32_0 = arith.constant 0 : i32
    %c0_i32_1 = arith.constant 0 : i32
    %c0_i32_2 = arith.constant 0 : i32
    return %c0_i32, %c0_i32_0, %c0_i32_1 : i32, i32, i32
  }
  func.func @transform_4(%arg0: i32) -> (i32, i32, i32) {
    %c0_i32 = arith.constant 0 : i32
    %c0_i32_0 = arith.constant 0 : i32
    %c0_i32_1 = arith.constant 0 : i32
    %c0_i32_2 = arith.constant 0 : i32
    return %c0_i32, %c0_i32_0, %c0_i32_1 : i32, i32, i32
  }
  func.func @transform_5(%arg0: i32) -> (i32, i32, i32) {
    %c0_i32 = arith.constant 0 : i32
    %c0_i32_0 = arith.constant 0 : i32
    %c0_i32_1 = arith.constant 0 : i32
    %c0_i32_2 = arith.constant 0 : i32
    return %c0_i32, %c0_i32_0, %c0_i32_1 : i32, i32, i32
  }
  func.func @transform_6(%arg0: i32) -> (i32, i32, i32) {
    %c0_i32 = arith.constant 0 : i32
    %c0_i32_0 = arith.constant 0 : i32
    %c0_i32_1 = arith.constant 0 : i32
    %c0_i32_2 = arith.constant 0 : i32
    return %c0_i32, %c0_i32_0, %c0_i32_1 : i32, i32, i32
  }
  func.func @transform_7(%arg0: i32) -> (i32, i32) {
    %c0_i32 = arith.constant 0 : i32
    %c0_i32_0 = arith.constant 0 : i32
    %c0_i32_1 = arith.constant 0 : i32
    return %c0_i32, %c0_i32_0 : i32, i32
  }
  func.func @transform_8(%arg0: i32) -> (i32, i32) {
    %c0_i32 = arith.constant 0 : i32
    %c0_i32_0 = arith.constant 0 : i32
    %c0_i32_1 = arith.constant 0 : i32
    return %c0_i32, %c0_i32_0 : i32, i32
  }
  func.func @transform_9(%arg0: i32) -> (i32, i32, i32) {
    %c0_i32 = arith.constant 0 : i32
    %c0_i32_0 = arith.constant 0 : i32
    %c0_i32_1 = arith.constant 0 : i32
    return %arg0, %c0_i32, %c0_i32_0 : i32, i32, i32
  }
}

</mosaic_0001>

<bundles_post_ra>
// kernel: tpu_custom_call.1
= control target key start
LH: loop header
LB: loop body
LE: loop exit
PB: predicated region body
PF: predicated region fallthrough
CT: control target
= control target key end

     0   :  { %s2117_s0 = inlined_call_operand.hbm [shape: bf16[2,16,32], index: 0, kind: input, shape index: {}]   ;;  %s2118_s1 = inlined_call_operand.hbm [shape: bf16[3,64,64], index: 1, kind: input, shape index: {}]   ;;  %s2119_s2 = inlined_call_operand.hbm [shape: f32[3,1,64], index: 2, kind: input, shape index: {}]   ;;  %s2120_s3 = inlined_call_operand.hbm [shape: bf16[3,32,32], index: 3, kind: input, shape index: {}]   ;;  %s2121_s4 = inlined_call_operand.vmem [shape: f32[3,1,32], index: 4, kind: input, shape index: {}]   ;;  %s2122_s5 = inlined_call_operand.hbm [shape: bf16[2,32,32], index: 5, kind: input, shape index: {}]   ;;  %s2123_s6 = inlined_call_operand.vmem [shape: f32[2,1,32], index: 6, kind: input, shape index: {}]   ;;  %s2124_s7 = inlined_call_operand.hbm [shape: bf16[32,128], index: 7, kind: input, shape index: {}]   ;;  %s2125_s8 = inlined_call_operand.vmem [shape: f32[1,128], index: 8, kind: input, shape index: {}]   ;;  %s2126_s9 = inlined_call_operand.hbm [shape: f32[2,16,128], index: 9, kind: output, shape index: {}]  }
   0x1   :  { %2129 = sst [smem:[#allocation20_spill]] %s2118_s1 }
   0x2   :  { %2130 = sst [smem:[#allocation21_spill]] %s2119_s2 }
   0x3   :  { %2131 = sst [smem:[#allocation22_spill]] %s2120_s3 }
   0x4   :  { %14 = vsyncpa [#allocation4], 0 }
   0x5   :  { %16 = vsyncpa [#allocation4 + $0x1], 0 }
   0x6   :  { %17 = vsyncpa [#allocation7], 0 }
   0x7   :  { %18 = vsyncpa [#allocation10], 0 }
   0x8   :  { %19 = vsyncpa [#allocation13], 0 }
   0x9   :  { %20 = vsyncpa [#allocation5], 0 }
   0xa   :  { %22 = vsyncpa [#allocation5 + $0x1], 0  ;;  %s1841_s30 = smov 0   ;;  %s1843_s10 = smov 0  }
   0xb   :  { %s1845_s11 = smov 0   ;;  %s1847_s12 = smov 0  }
   0xc LB: > { %s2132_s1 = sld [smem:[#allocation20_spill]]  ;;  %s1865_s16 = sadd.s32 4294967295, %s1775_s12   ;;  %s1775_s12 = sphi %s1847_s12, %s2147_s12   ;;  %s1771_s11 = sphi %s1845_s11, %s2146_s11   ;;  %s1767_s10 = sphi %s1843_s10, %s2145_s10   ;;  %s1763_s30 = sphi %s1841_s30, %s2144_s30  }
   0xd   : > { %p1198_p0 = scmp.ge.s32.totalorder %s1775_s12, 1  ;;  %p49_p1 = scmp.eq.s32.totalorder %s1865_s16, 0 }
   0xe   : > { %p253_p2 = scmp.lt.s32.totalorder %s1775_s12, 3  ;;  %s1777_s18 = smov [#allocation6]  }
   0xf   : > { %s266_s19 = sshll.u32 %s1777_s18, 4  ;;  %s2134_s3 = sld [smem:[#allocation22_spill]]  ;;  %s267_s19 = int_to_ptr.vmem [resolvable:$true] %s266_s19 }
  0x10   : > { %p1870_p3 = pnand %p1198_p0, %p253_p2  ;;  %s2136_s2 = sld [smem:[#allocation21_spill]] }
  0x11   : > { %s1778_s27 = smov [#allocation9]   ;;  %s2127_s29 = smov 64  }
  0x12   : > { %s264_s15 = sshll.u32 %s2132_s1, 4  ;;  %p1390_p4 = pneg %p1870_p3  ;;  %s265_s15 = int_to_ptr.hbm [resolvable:$true] %s264_s15 }
  0x13   : > { %s294_s28 = sshll.u32 %s1778_s27, 4  ;;  %s2128_s13 = smov 4   ;;  %s295_s28 = int_to_ptr.vmem [resolvable:$true] %s294_s28 }
  0x14   : > { %p1882_p6 = pnand %p1390_p4, %p49_p1  ;;  %s1781_s14 = smov [#allocation8]  }
  0x15   : > { %s292_s22 = sshll.u32 %s2134_s3, 4  ;;  %s280_s18 = sshll.u32 %s1781_s14, 4  ;;  %s293_s22 = int_to_ptr.hbm [resolvable:$true] %s292_s22  ;;  %s281_s18 = int_to_ptr.vmem [resolvable:$true] %s280_s18 }
  0x16   : > { %s278_s26 = sshll.u32 %s2136_s2, 4  ;;  %s309_s24 = sshll.u32 %s2122_s5, 4  ;;  %s279_s26 = int_to_ptr.hbm [resolvable:$true] %s278_s26  ;;  %s310_s24 = int_to_ptr.hbm [resolvable:$true] %s309_s24 }
  0x17   : > { %1393 = dma.hbm_to_vmem [thread:$0]  (!%p1882_p6), %s265_s15, 1536, %s267_s19, [#allocation7], %s2127_s29, %s2127_s29, %s2128_s13  }
  0x18   : > { %1399 = dma.hbm_to_vmem [thread:$0]  (!%p1882_p6), %s293_s22, 768, %s295_s28, [#allocation10], %s2127_s29, %s2127_s29, %s2128_s13  }
  0x19   : > { %s1782_s25 = smov 16   ;;  %s1783_s15 = smov 1  }
  0x1a   : > { %1396 = dma.hbm_to_vmem [thread:$0]  (!%p1882_p6), %s279_s26, 48, %s281_s18, [#allocation7], %s1782_s25, %s1782_s25, %s1783_s15  }
  0x1b   : > { %s1784_s19 = smov [#allocation11]   ;;  %s326_s14 = sshll.u32 %s2124_s7, 4  ;;  %s327_s14 = int_to_ptr.hbm [resolvable:$true] %s326_s14 }
  0x1c   : > { %s311_s22 = sshll.u32 %s1784_s19, 4  ;;  %s1785_s26 = smov [#allocation12]   ;;  %s312_s22 = int_to_ptr.vmem [resolvable:$true] %s311_s22 }
  0x1d   : > { %1402 = dma.hbm_to_vmem [thread:$0]  (!%p1882_p6), %s310_s24, 512, %s312_s22, [#allocation10], %s2127_s29, %s2127_s29, %s2128_s13  }
  0x1e   : > { %s328_s18 = sshll.u32 %s1785_s26, 4  ;;  %s1197_s20 = sadd.s32 4294967294, %s1775_s12   ;;  %s329_s18 = int_to_ptr.vmem [resolvable:$true] %s328_s18 }
  0x1f   : > { %1405 = dma.hbm_to_vmem [thread:$0]  (!%p1882_p6), %s327_s14, 256, %s329_s18, [#allocation13], %s2127_s29, %s2127_s29, %s2128_s13  }
  0x20   : > { %s1919_s21 = sadd.s32 1, %s1775_s12   ;;  %s35_s25 = sadd.s32 1, %s1771_s11 }
  0x21   : > { %s32_s15 = ssub.s32 %s1775_s12, %s1919_s21  ;;  %p42_p7 = scmp.ne.s32.totalorder %s1771_s11, %s1767_s10 }
  0x22   : > { %p33_p8 = scmp.eq.s32.totalorder %s32_s15, 0  ;;  %p43_p9 = scmp.eq.s32.totalorder %s1775_s12, 0 }
  0x23   : > { %p48_p10 = scmp.ne.s32.totalorder %s1767_s10, %s1763_s30  ;;  %p240_p11 = scmp.eq.s32.totalorder %s1865_s16, 1 }
  0x24   : > { %s1931_s24 = scalar_select %p33_p8, %s1771_s11, %s35_s25  }
  0x25   : > { %p1935_p12 = por %p49_p1, %p48_p10  ;;  %p1939_p13 = por %p240_p11, %p42_p7 }
  0x26   : > { %p246_p0 = scmp.eq.s32.totalorder %s1197_s20, 1  ;;  %p44_p2 = por %p43_p9, %p42_p7 }
  0x27   : > { %s345_s22 = sand.u32 1, %s1771_s11   ;;  %p1419_p6 = scmp.lt.s32.totalorder %s1775_s12, 2 }
  0x28   : > { %p1944_p4 = por %p246_p0, %p48_p10  ;;  %s1205_s28 = sshll.u32 %s345_s22, 3 }
  0x29   : > { %s1339_s14 = sshll.u32 %s1775_s12, 3  ;;  %s349_s29 = scalar_lea.vmem [#allocation3], %s1205_s28 }
  0x2a   : > { %s354_s25 = scalar_lea.hbm %s2117_s0, %s1339_s14  ;;  %s357_s13 = sshll.u32 %s349_s29, 4  ;;  %s358_s13 = int_to_ptr.vmem [resolvable:$true] %s357_s13 }
  0x2b   : > { %s355_s15 = sshll.u32 %s354_s25, 4  ;;  %p1953_p8 = pnand %p1419_p6, %p44_p2  ;;  %s356_s15 = int_to_ptr.hbm [resolvable:$true] %s355_s15 }
  0x2c   : > { %s346_s1 = scalar_lea.sflag [#allocation4], %s345_s22  ;;  %s1667_s2 = sshra.s32 %s356_s15, 4  ;;  %s1668_s2 = int_to_ptr.hbm [resolvable:$true] %s1667_s2 }
  0x2d   : > { %s1669_s3 = scalar_lea.hbm %s1668_s2, 8  ;;  %p1671_p9 = pneg %p1953_p8 }
  0x2e   : > { %p1670_p7 = scmp.ne.s32.totalorder %s1668_s2, %s1669_s3  ;;  %s1674_s29 = scalar_lea.hbm %s2117_s0, 16 }
  0x2f   : > { %p1675_p0 = scmp.lt.s32.totalorder %s1668_s2, %s2117_s0  ;;  %p1676_p2 = scmp.lt.s32.totalorder %s1674_s29, %s1669_s3 }
  0x30   : > { %p1672_p10 = pnand %p1671_p9, %p1670_p7 }
  0x31   : > { %p1677_p6 = por %p1676_p2, %p1675_p0 }
  0x32   : > { %p1673_p11 = pneg %p1672_p10 }
  0x34   : > { %p1678_p5 = pnand %p1677_p6, %p1673_p11 }
  0x36   : > { %1681 = shalt.err (!%p1678_p5)
}
  0x37   : > { %s2141_s22 = smov 4   ;;  %s2142_s25 = smov 64  }
  0x38   : > { %1409 = dma.hbm_to_vmem [thread:$0]  (!%p1953_p8), %s356_s15, 128, %s358_s13, %s346_s1, %s2142_s25, %s2142_s25, %s2141_s22  }
  0x39   : > { %369 = sbr.rel (%p1870_p3) target bundleno = 2127 (0x84f), region = 56  ;;  %s1973_s14 = sand.u32 (!%p1870_p3), 1, %s1767_s10  }
  0x3a   : > { %s1209_s2 = sshll.u32 (!%p1870_p3), %s1973_s14, 3  ;;  %s372_s3 = scalar_lea.sflag (!%p1870_p3), [#allocation4], %s1973_s14 }
  0x3b   : > { %s375_s26 = scalar_lea.vmem (!%p1870_p3), [#allocation3], %s1209_s2 }
  0x3e   : > { %1742 = dma.done.wait (%p1935_p12), %s372_s3, 128  }
  0x3f   : > { %1744 = vsyncadd (%p1935_p12), %s372_s3, 4294967168 }
  0x40   : > { %1746 = dma.done.wait (%p49_p1), [#allocation7], 1584  }
  0x41   : > { %1748 = vsyncadd (%p49_p1), [#allocation7], 4294965712 }
  0x42   : > { %1750 = dma.done.wait (%p49_p1), [#allocation10], 1280  }
  0x43   : > { %1752 = vsyncadd (%p49_p1), [#allocation10], 4294966016 }
  0x44   : > { %1754 = dma.done.wait (%p49_p1), [#allocation13], 256  }
  0x45   : > { %1756 = vsyncadd (%p49_p1), [#allocation13], 4294967040  ;;  %v1342_v0 = vld [vmem:[#allocation11 + $0x8] sm:$0xff]  ;;  %v1341_v1 = vld [vmem:[#allocation11] sm:$0xff]  ;;  %vm464_vm0 = vcmask 261120   ;;  %vm482_vm1 = vcmask 253952  }
  0x46   : > { %474 = vmatpush.bf16.msra.mxu0 %v1342_v0  ;;  %v1340_v2 = vld [vmem:[%s375_s26] sm:$0xff]  ;;  %v1786_v3 = vmov 0.0   ;;  %s1787_s13 = smov 32   ;;  %v1344_v11 = vld [vmem:[#allocation6 + $0x8] sm:$0xff]  ;;  %v1343_v12 = vld [vmem:[#allocation6] sm:$0xff]  ;;  %vm494_vm2 = vcmask 523520  }
  0x47   : > { %483 = vst.msk [vmem:[#allocation2] sm:$0x1] %vm482_vm1, %v1786_v3  ;;  %v1472_v4 = vld [vmem:[%s2123_s6] ss:$0 sm:$0xff]  ;;  %v1345_v10 = vld [vmem:[#allocation6 + $0x10] sm:$0xff]  ;;  %vm646_vm3 = vcmask 254976  }
  0x48   : > { %v1346_v9 = vld [vmem:[#allocation6 + $0x18] sm:$0xff]  ;;  %vm536_vm4 = vcmask 523264   ;;  %v1473_v18 = vld [vmem:[#allocation8] ss:$0 sm:$0xff]  ;;  %s1788_s23 = smov 96   ;;  %v1348_v49 = vld [vmem:[#allocation9 + $0x8] sm:$0xff] }
  0x49   : > { %544 = vmatpush.bf16.msra.mxu1 %v1346_v9  ;;  %634 = vmatpush.bf16.msra.mxu2 %v1348_v49  ;;  %v1347_v50 = vld [vmem:[#allocation9] sm:$0xff]  ;;  %v1474_v58 = vld [vmem:[%s2121_s4] ss:$0 sm:$0xff]  ;;  %vm812_vm13 = vcmask 257024   ;;  %s1215_s3 = sshll.u32 %s1973_s14, 4  ;;  %s1365_s17 = sshll.u32 %s1865_s16, 4 }
  0x4a   : > { %475 = vmatpush.bf16.msra.mxu0 %v1341_v1  ;;  %v1352_v1 = vld [vmem:[#allocation6 + $0x38] sm:$0xff]  ;;  %s1072_s15 = scalar_lea.hbm %s2126_s9, %s1365_s17  ;;  %s435_s20 = scalar_lea.vmem [#allocation14], %s1215_s3 }
  0x4b   : > { %708 = vmatpush.bf16.msra.mxu3 %v1352_v1  ;;  %s1073_s29 = sshll.u32 %s435_s20, 4  ;;  %s1075_s28 = sshll.u32 %s1072_s15, 4  ;;  %s1074_s29 = int_to_ptr.vmem [resolvable:$true] %s1073_s29  ;;  %s1076_s28 = int_to_ptr.hbm [resolvable:$true] %s1075_s28 }
  0x4c   : > { %s1061_s18 = scalar_lea.sflag [#allocation5], %s1973_s14  ;;  %s1711_s22 = sshra.s32 %s1076_s28, 4  ;;  %s1712_s22 = int_to_ptr.hbm [resolvable:$true] %s1711_s22 }
  0x4d   : > { %1228 = vmatmul.msk.bf16.vlgmr.msra.gmra.mxu0 %vm464_vm0, %v1340_v2  ;;  %545 = vmatpush.bf16.msra.mxu1 %v1345_v10  ;;  %v1351_v2 = vld [vmem:[#allocation6 + $0x30] sm:$0xff]  ;;  %s1713_s16 = scalar_lea.hbm %s1712_s22, 16  ;;  %s1717_s3 = scalar_lea.hbm %s2126_s9, 32 }
  0x4e   : > { %635 = vmatpush.bf16.msra.mxu2 %v1347_v50  ;;  %v1476_v50 = vld [vmem:[%s2121_s4 + $0x1] ss:$0 sm:$0xff]  ;;  %p1714_p1 = scmp.ne.s32.totalorder %s1712_s22, %s1713_s16  ;;  %p1718_p12 = scmp.lt.s32.totalorder %s1712_s22, %s2126_s9 }
  0x4f   : > { %709 = vmatpush.bf16.msra.mxu3 %v1351_v2  ;;  %p1719_p8 = scmp.lt.s32.totalorder %s1717_s3, %s1713_s16 }
  0x50   : > { %p1715_p3 = pnand %p1714_p1, %p1939_p13 }
  0x51   : > { %546 = vmatpush.bf16.msra.mxu1 %v1344_v11  ;;  %v1475_v11 = vld [vmem:[#allocation8 + $0x1] ss:$0 sm:$0xff]  ;;  %p1720_p7 = por %p1719_p8, %p1718_p12 }
  0x52   : > { %p1716_p5 = pneg %p1715_p3 }
  0x54   : > { %p1721_p9 = pnand %p1720_p7, %p1716_p5 }
  0x55   : > { %547 = vmatpush.bf16.msra.mxu1 %v1343_v12 }
  0xca   : > { %v477_v5 = vpop.f32.mrf.mxu0 }
  0xcb   : > { %v1998_v6 = vadd.f32 %v1472_v4, %v477_v5  ;;  %v1349_v5 = vld [vmem:[#allocation6 + $0x20] sm:$0xff] }
  0xcd   : > { %484 = vst.msk [vmem:[#allocation2 + $0x1] sm:$0xff] %vm464_vm0, %v1998_v6  ;;  %488 = vrot.lane.b32.xlu0 %v1998_v6, %s1787_s13 }
  0xd2   : > { %v479_v7 = vpop.f32.mrf.mxu0 }
  0xd3   : > { %v2004_v8 = vadd.f32 %v1472_v4, %v479_v7  ;;  %v1350_v4 = vld [vmem:[#allocation6 + $0x28] sm:$0xff] }
  0xd4   : > { %710 = vmatpush.bf16.msra.mxu3 %v1350_v4 }
  0xd5   : > { %485 = vst.msk [vmem:[#allocation2 + $0x9] sm:$0xff] %vm464_vm0, %v2004_v8  ;;  %490 = vrot.lane.b32.xlu0 %v2004_v8, %s1787_s13 }
  0xd8   : > { %711 = vmatpush.bf16.msra.mxu3 %v1349_v5  ;;  %v1477_v5 = vld [vmem:[#allocation8 + $0x2] ss:$0 sm:$0xff] }
 0x13f   : > { %v489_v13 = vpop.permute.xlu0 %488 }
 0x140   : > { %495 = vst.msk [vmem:[#allocation2] sm:$0xff] %vm494_vm2, %v489_v13 }
 0x147   : > { %v491_v14 = vpop.permute.xlu0 %490  ;;  %v497_v15 = vld [vmem:[#allocation2] sm:$0xff] }
 0x148   : > { %496 = vst.msk [vmem:[#allocation2 + $0x8] sm:$0xff] %vm494_vm2, %v491_v14 }
 0x149   : > { %647 = vst.msk [vmem:[#allocation2] sm:$0x3] %vm646_vm3, %v1786_v3 }
 0x14f   : > { %v498_v16 = vld [vmem:[#allocation2 + $0x8] sm:$0xff] }
 0x150   : > { %v499_v17 = vpack.c.bf16 %v498_v16, %v497_v15  ;;  %v1354_v15 = vld [vmem:[#allocation9 + $0x18] sm:$0xff] }
 0x151   : > { %800 = vmatpush.bf16.msrb.mxu0 %v1354_v15 }
 0x152   : > { %1245 = vmatmul.msk.bf16.vlgmr.msra.gmra.mxu1 %vm536_vm4, %v499_v17 }
 0x1cf   : > { %v549_v19 = vpop.f32.mrf.mxu1 }
 0x1d0   : > { %v550_v20 = vadd.f32 %v1473_v18, %v549_v19 }
 0x1d2   : > { %v1246_v21 = vmul.f32 -1.442695, %v550_v20 }
 0x1d4   : > { %1481 = vpow2.f32 %v1246_v21 }
 0x1d7   : > { %v551_v22 = vpop.f32.mrf.mxu1 }
 0x1d8   : > { %v552_v23 = vadd.f32 %v1473_v18, %v551_v22 }
 0x1da   : > { %v1482_v24 = vpop.eup %1481  ;;  %v1247_v25 = vmul.f32 -1.442695, %v552_v23 }
 0x1db   : > { %v562_v26 = vadd.f32 1.0, %v1482_v24 }
 0x1dc   : > { %1483 = vpow2.f32 %v1247_v25 }
 0x1dd   : > { %1485 = vrcp.f32 %v562_v26  ;;  %v575_v32 = vand.u32 2147483648, %v562_v26  ;;  %v573_v34 = vand.u32 2147483647, %v562_v26  ;;  %vm569_vm6 = vweird.f32 %v562_v26 }
 0x1df   : > { %v576_v37 = vor.u32 1.1754944e-38, %v575_v32  ;;  %vm574_vm8 = vcmp.eq.f32.partialorder %v573_v34, 8.507059e+37 }
 0x1e2   : > { %v1484_v27 = vpop.eup %1483 }
 0x1e3   : > { %v1486_v28 = vpop.eup %1485  ;;  %v563_v29 = vadd.f32 1.0, %v1484_v27 }
 0x1e4   : > { %v565_v30 = vmul.f32 %v1486_v28, %v562_v26  ;;  %vm570_vm5 = vweird.f32 %v1486_v28 }
 0x1e5   : > { %1487 = vrcp.f32 %v563_v29  ;;  %vm571_vm7 = vmor %vm569_vm6, %vm570_vm5  ;;  %v590_v42 = vand.u32 2147483648, %v563_v29  ;;  %v588_v44 = vand.u32 2147483647, %v563_v29  ;;  %vm584_vm10 = vweird.f32 %v563_v29 }
 0x1e6   : > { %v566_v31 = vsub.f32 1.0, %v565_v30  ;;  %1489 = vtanh.f32 %v550_v20 }
 0x1e7   : > { %v591_v46 = vor.u32 1.1754944e-38, %v590_v42  ;;  %vm589_vm12 = vcmp.eq.f32.partialorder %v588_v44, 8.507059e+37  ;;  %1491 = vtanh.f32 %v552_v23  ;;  %v1353_v42 = vld [vmem:[#allocation9 + $0x10] sm:$0xff] }
 0x1e8   : > { %v567_v33 = vmul.f32 %v1486_v28, %v566_v31  ;;  %801 = vmatpush.bf16.msrb.mxu0 %v1353_v42 }
 0x1ea   : > { %v568_v35 = vadd.f32 %v1486_v28, %v567_v33 }
 0x1eb   : > { %v1488_v36 = vpop.eup %1487 }
 0x1ec   : > { %v572_v38 = vsel %vm571_vm7, %v1486_v28, %v568_v35  ;;  %v580_v39 = vmul.f32 %v1488_v36, %v563_v29  ;;  %vm585_vm9 = vweird.f32 %v1488_v36  ;;  %v1490_v52 = vpop.eup %1489 }
 0x1ed   : > { %v577_v40 = vsel %vm574_vm8, %v576_v37, %v572_v38  ;;  %vm586_vm11 = vmor %vm584_vm10, %vm585_vm9  ;;  %v1492_v53 = vpop.eup %1491 }
 0x1ee   : > { %596 = vrot.lane.b32.xlu1 %v577_v40, %s1788_s23  ;;  %v581_v41 = vsub.f32 1.0, %v580_v39 }
 0x1f0   : > { %v582_v43 = vmul.f32 %v1488_v36, %v581_v41 }
 0x1f2   : > { %v583_v45 = vadd.f32 %v1488_v36, %v582_v43 }
 0x1f4   : > { %v587_v47 = vsel %vm586_vm11, %v1488_v36, %v583_v45 }
 0x1f5   : > { %v592_v48 = vsel %vm589_vm12, %v591_v46, %v587_v47 }
 0x1f6   : > { %598 = vrot.lane.b32.xlu1 %v592_v48, %s1788_s23 }
 0x260   : > { %v597_v51 = vpop.permute.xlu1 %596 }
 0x261   : > { %v602_v55 = vmul.f32 %v1490_v52, %v597_v51 }
 0x268   : > { %v599_v54 = vpop.permute.xlu1 %598 }
 0x269   : > { %v603_v56 = vmul.f32 %v1492_v53, %v599_v54 }
 0x26b   : > { %v604_v57 = vpack.c.bf16 %v603_v56, %v602_v55 }
 0x26d   : > { %1256 = vmatmul.msk.bf16.vlgmr.msra.gmra.mxu2 %vm464_vm0, %v604_v57  ;;  %v1358_v57 = vld [vmem:[#allocation6 + $0x58] sm:$0xff] }
 0x26e   : > { %874 = vmatpush.bf16.msrb.mxu2 %v1358_v57 }
 0x2f0   : > { %v637_v59 = vpop.f32.mrf.mxu2 }
 0x2f1   : > { %v2020_v60 = vadd.f32 %v1474_v58, %v637_v59 }
 0x2f3   : > { %v2024_v61 = vadd.f32 %v2020_v60, %v1998_v6 }
 0x2f5   : > { %648 = vst.msk [vmem:[#allocation2 + $0x2] sm:$0xff] %vm464_vm0, %v2024_v61  ;;  %652 = vrot.lane.b32.xlu2 %v2024_v61, %s1787_s13 }
 0x2f8   : > { %v639_v62 = vpop.f32.mrf.mxu2 }
 0x2f9   : > { %v2030_v63 = vadd.f32 %v1474_v58, %v639_v62  ;;  %v1357_v58 = vld [vmem:[#allocation6 + $0x50] sm:$0xff]  ;;  %v1355_v62 = vld [vmem:[#allocation6 + $0x40] sm:$0xff] }
 0x2fa   : > { %875 = vmatpush.bf16.msrb.mxu2 %v1357_v58 }
 0x2fb   : > { %v2034_v0 = vadd.f32 %v2030_v63, %v2004_v8 }
 0x2fd   : > { %649 = vst.msk [vmem:[#allocation2 + $0xa] sm:$0xff] %vm464_vm0, %v2034_v0  ;;  %654 = vrot.lane.b32.xlu2 %v2034_v0, %s1787_s13 }
 0x34f   : > { %v653_v6 = vpop.permute.xlu2 %652 }
 0x350   : > { %658 = vst.msk [vmem:[#allocation2] sm:$0xff] %vm494_vm2, %v653_v6 }
 0x357   : > { %v655_v7 = vpop.permute.xlu2 %654  ;;  %v660_v8 = vld [vmem:[#allocation2] sm:$0xff] }
 0x358   : > { %659 = vst.msk [vmem:[#allocation2 + $0x8] sm:$0xff] %vm494_vm2, %v655_v7 }
 0x359   : > { %813 = vst.msk [vmem:[#allocation2] sm:$0xf] %vm812_vm13, %v1786_v3 }
 0x35f   : > { %v661_v9 = vld [vmem:[#allocation2 + $0x8] sm:$0xff] }
 0x360   : > { %v662_v10 = vpack.c.bf16 %v661_v9, %v660_v8 }
 0x362   : > { %1273 = vmatmul.msk.bf16.vlgmr.msra.gmra.mxu3 %vm536_vm4, %v662_v10 }
 0x3e5   : > { %v713_v12 = vpop.f32.mrf.mxu3 }
 0x3e6   : > { %v714_v13 = vadd.f32 %v1475_v11, %v713_v12 }
 0x3e8   : > { %v1274_v14 = vmul.f32 -1.442695, %v714_v13 }
 0x3ea   : > { %1493 = vpow2.f32 %v1274_v14 }
 0x3ed   : > { %v715_v16 = vpop.f32.mrf.mxu3 }
 0x3ee   : > { %v716_v17 = vadd.f32 %v1475_v11, %v715_v16 }
 0x3f0   : > { %v1494_v18 = vpop.eup %1493  ;;  %v1275_v19 = vmul.f32 -1.442695, %v716_v17 }
 0x3f1   : > { %v726_v20 = vadd.f32 1.0, %v1494_v18 }
 0x3f2   : > { %1495 = vpow2.f32 %v1275_v19 }
 0x3f3   : > { %1497 = vrcp.f32 %v726_v20  ;;  %v739_v25 = vand.u32 2147483648, %v726_v20  ;;  %v737_v27 = vand.u32 2147483647, %v726_v20  ;;  %vm733_vm15 = vweird.f32 %v726_v20 }
 0x3f5   : > { %v740_v30 = vor.u32 1.1754944e-38, %v739_v25  ;;  %vm738_vm3 = vcmp.eq.f32.partialorder %v737_v27, 8.507059e+37 }
 0x3f8   : > { %v1496_v21 = vpop.eup %1495 }
 0x3f9   : > { %v1498_v3 = vpop.eup %1497  ;;  %v727_v22 = vadd.f32 1.0, %v1496_v21 }
 0x3fa   : > { %v729_v23 = vmul.f32 %v1498_v3, %v726_v20  ;;  %vm734_vm14 = vweird.f32 %v1498_v3 }
 0x3fb   : > { %1499 = vrcp.f32 %v727_v22  ;;  %vm735_vm1 = vmor %vm733_vm15, %vm734_vm14  ;;  %v754_v35 = vand.u32 2147483648, %v727_v22  ;;  %v752_v37 = vand.u32 2147483647, %v727_v22  ;;  %vm748_vm6 = vweird.f32 %v727_v22 }
 0x3fc   : > { %v730_v24 = vsub.f32 1.0, %v729_v23  ;;  %1501 = vtanh.f32 %v714_v13 }
 0x3fd   : > { %v755_v39 = vor.u32 1.1754944e-38, %v754_v35  ;;  %vm753_vm8 = vcmp.eq.f32.partialorder %v752_v37, 8.507059e+37  ;;  %1503 = vtanh.f32 %v716_v17  ;;  %v1360_v35 = vld [vmem:[#allocation9 + $0x28] sm:$0xff] }
 0x3fe   : > { %v731_v26 = vmul.f32 %v1498_v3, %v730_v24  ;;  %966 = vmatpush.bf16.msrb.mxu1 %v1360_v35 }
 0x400   : > { %v732_v28 = vadd.f32 %v1498_v3, %v731_v26 }
 0x401   : > { %v1500_v29 = vpop.eup %1499 }
 0x402   : > { %v736_v31 = vsel %vm735_vm1, %v1498_v3, %v732_v28  ;;  %v744_v32 = vmul.f32 %v1500_v29, %v727_v22  ;;  %vm749_vm5 = vweird.f32 %v1500_v29  ;;  %v1502_v44 = vpop.eup %1501 }
 0x403   : > { %v741_v33 = vsel %vm738_vm3, %v740_v30, %v736_v31  ;;  %vm750_vm7 = vmor %vm748_vm6, %vm749_vm5  ;;  %v1504_v45 = vpop.eup %1503 }
 0x404   : > { %760 = vrot.lane.b32.xlu0 %v741_v33, %s1788_s23  ;;  %v745_v34 = vsub.f32 1.0, %v744_v32 }
 0x406   : > { %v746_v36 = vmul.f32 %v1500_v29, %v745_v34 }
 0x408   : > { %v747_v38 = vadd.f32 %v1500_v29, %v746_v36  ;;  %v1359_v36 = vld [vmem:[#allocation9 + $0x20] sm:$0xff] }
 0x409   : > { %967 = vmatpush.bf16.msrb.mxu1 %v1359_v36 }
 0x40a   : > { %v751_v40 = vsel %vm750_vm7, %v1500_v29, %v747_v38 }
 0x40b   : > { %v756_v41 = vsel %vm753_vm8, %v755_v39, %v751_v40 }
 0x40c   : > { %762 = vrot.lane.b32.xlu1 %v756_v41, %s1788_s23 }
 0x476   : > { %v761_v43 = vpop.permute.xlu0 %760 }
 0x477   : > { %v766_v47 = vmul.f32 %v1502_v44, %v761_v43  ;;  %v1362_v44 = vld [vmem:[#allocation11 + $0x18] sm:$0xff] }
 0x478   : > { %1010 = vmatpush.bf16.msrb.mxu3 %v1362_v44 }
 0x47e   : > { %v763_v46 = vpop.permute.xlu1 %762 }
 0x47f   : > { %v767_v48 = vmul.f32 %v1504_v45, %v763_v46  ;;  %v1361_v45 = vld [vmem:[#allocation11 + $0x10] sm:$0xff]  ;;  %v1364_v46 = vld [vmem:[#allocation12 + $0x8] sm:$0xff] }
 0x480   : > { %1011 = vmatpush.bf16.msrb.mxu3 %v1361_v45  ;;  %1050 = vmatpush.bf16.msra.mxu0 %v1364_v46 }
 0x481   : > { %v768_v49 = vpack.c.bf16 %v767_v48, %v766_v47  ;;  %v1478_v48 = vld [vmem:[%s2121_s4 + $0x2] ss:$0 sm:$0xff] }
 0x483   : > { %1285 = vmatmul.msk.bf16.vlgmr.msrb.gmra.mxu0 %vm464_vm0, %v768_v49 }
 0x500   : > { %v803_v51 = vpop.f32.mrf.mxu0 }
 0x501   : > { %v2050_v52 = vadd.f32 %v1476_v50, %v803_v51 }
 0x503   : > { %v808_v53 = vadd.f32 %v2050_v52, %v2024_v61  ;;  %v1356_v61 = vld [vmem:[#allocation6 + $0x48] sm:$0xff] }
 0x504   : > { %876 = vmatpush.bf16.msrb.mxu2 %v1356_v61 }
 0x505   : > { %814 = vst.msk [vmem:[#allocation2 + $0x4] sm:$0xff] %vm464_vm0, %v808_v53  ;;  %818 = vrot.lane.b32.xlu2 %v808_v53, %s1787_s13 }
 0x508   : > { %v805_v54 = vpop.f32.mrf.mxu0  ;;  %877 = vmatpush.bf16.msrb.mxu2 %v1355_v62  ;;  %v1363_v62 = vld [vmem:[#allocation12] sm:$0xff] }
 0x509   : > { %v2056_v55 = vadd.f32 %v1476_v50, %v805_v54  ;;  %v810_v50 = vadd.f32 %v2050_v52, %v2020_v60  ;;  %1051 = vmatpush.bf16.msra.mxu0 %v1363_v62  ;;  %v1479_v60 = vld [vmem:[%s2123_s6 + $0x1] ss:$0 sm:$0xff] }
 0x50b   : > { %v809_v56 = vadd.f32 %v2056_v55, %v2034_v0  ;;  %v811_v53 = vadd.f32 %v2056_v55, %v2030_v63 }
 0x50d   : > { %815 = vst.msk [vmem:[#allocation2 + $0xc] sm:$0xff] %vm464_vm0, %v809_v56  ;;  %820 = vrot.lane.b32.xlu0 %v809_v56, %s1787_s13 }
 0x55f   : > { %v819_v59 = vpop.permute.xlu2 %818 }
 0x560   : > { %824 = vst.msk [vmem:[#allocation2] sm:$0xff] %vm494_vm2, %v819_v59 }
 0x567   : > { %v826_v2 = vld [vmem:[#allocation2] sm:$0xff] }
 0x57f   : > { %v821_v1 = vpop.permute.xlu0 %820 }
 0x580   : > { %825 = vst.msk [vmem:[#allocation2 + $0x8] sm:$0xff] %vm494_vm2, %v821_v1 }
 0x587   : > { %v827_v0 = vld [vmem:[#allocation2 + $0x8] sm:$0xff] }
 0x588   : > { %v828_v4 = vpack.c.bf16 %v827_v0, %v826_v2 }
 0x58a   : > { %1302 = vmatmul.msk.bf16.vlgmr.msrb.gmra.mxu2 %vm536_vm4, %v828_v4 }
 0x60d   : > { %v879_v6 = vpop.f32.mrf.mxu2 }
 0x60e   : > { %v880_v7 = vadd.f32 %v1477_v5, %v879_v6 }
 0x610   : > { %v1303_v8 = vmul.f32 -1.442695, %v880_v7 }
 0x612   : > { %1505 = vpow2.f32 %v1303_v8 }
 0x615   : > { %v881_v9 = vpop.f32.mrf.mxu2 }
 0x616   : > { %v882_v10 = vadd.f32 %v1477_v5, %v881_v9  ;;  %v1480_v5 = vld [vmem:[%s2125_s8] ss:$0 sm:$0xff] }
 0x618   : > { %v1506_v11 = vpop.eup %1505  ;;  %v1304_v12 = vmul.f32 -1.442695, %v882_v10 }
 0x619   : > { %v892_v13 = vadd.f32 1.0, %v1506_v11 }
 0x61a   : > { %1507 = vpow2.f32 %v1304_v12 }
 0x61b   : > { %1509 = vrcp.f32 %v892_v13  ;;  %v905_v19 = vand.u32 2147483648, %v892_v13  ;;  %v903_v21 = vand.u32 2147483647, %v892_v13  ;;  %vm899_vm4 = vweird.f32 %v892_v13 }
 0x61d   : > { %v906_v23 = vor.u32 1.1754944e-38, %v905_v19  ;;  %vm904_vm10 = vcmp.eq.f32.partialorder %v903_v21, 8.507059e+37 }
 0x620   : > { %v1508_v14 = vpop.eup %1507 }
 0x621   : > { %v1510_v15 = vpop.eup %1509  ;;  %v893_v16 = vadd.f32 1.0, %v1508_v14 }
 0x622   : > { %v895_v17 = vmul.f32 %v1510_v15, %v892_v13  ;;  %vm900_vm2 = vweird.f32 %v1510_v15 }
 0x623   : > { %1511 = vrcp.f32 %v893_v16  ;;  %vm901_vm9 = vmor %vm899_vm4, %vm900_vm2  ;;  %v920_v28 = vand.u32 2147483648, %v893_v16  ;;  %v918_v30 = vand.u32 2147483647, %v893_v16  ;;  %vm914_vm12 = vweird.f32 %v893_v16 }
 0x624   : > { %v896_v18 = vsub.f32 1.0, %v895_v17  ;;  %1513 = vtanh.f32 %v880_v7 }
 0x625   : > { %v921_v32 = vor.u32 1.1754944e-38, %v920_v28  ;;  %vm919_vm14 = vcmp.eq.f32.partialorder %v918_v30, 8.507059e+37  ;;  %1515 = vtanh.f32 %v882_v10 }
 0x626   : > { %v897_v20 = vmul.f32 %v1510_v15, %v896_v18 }
 0x628   : > { %v898_v3 = vadd.f32 %v1510_v15, %v897_v20 }
 0x629   : > { %v1512_v22 = vpop.eup %1511 }
 0x62a   : > { %v902_v24 = vsel %vm901_vm9, %v1510_v15, %v898_v3  ;;  %v910_v25 = vmul.f32 %v1512_v22, %v893_v16  ;;  %vm915_vm11 = vweird.f32 %v1512_v22  ;;  %v1514_v38 = vpop.eup %1513 }
 0x62b   : > { %v907_v26 = vsel %vm904_vm10, %v906_v23, %v902_v24  ;;  %vm916_vm13 = vmor %vm914_vm12, %vm915_vm11  ;;  %v1516_v39 = vpop.eup %1515 }
 0x62c   : > { %926 = vrot.lane.b32.xlu1 %v907_v26, %s1788_s23  ;;  %v911_v27 = vsub.f32 1.0, %v910_v25 }
 0x62e   : > { %v912_v29 = vmul.f32 %v1512_v22, %v911_v27 }
 0x630   : > { %v913_v31 = vadd.f32 %v1512_v22, %v912_v29 }
 0x632   : > { %v917_v33 = vsel %vm916_vm13, %v1512_v22, %v913_v31 }
 0x633   : > { %v922_v34 = vsel %vm919_vm14, %v921_v32, %v917_v33 }
 0x634   : > { %928 = vrot.lane.b32.xlu2 %v922_v34, %s1788_s23 }
 0x68e   : > { %v929_v37 = vpop.permute.xlu2 %928 }
 0x68f   : > { %v933_v41 = vmul.f32 %v1516_v39, %v929_v37 }
 0x69e   : > { %v927_v40 = vpop.permute.xlu1 %926 }
 0x69f   : > { %v932_v42 = vmul.f32 %v1514_v38, %v927_v40 }
 0x6a1   : > { %v934_v43 = vpack.c.bf16 %v933_v41, %v932_v42 }
 0x6a3   : > { %1314 = vmatmul.msk.bf16.vlgmr.msrb.gmra.mxu1 %vm464_vm0, %v934_v43 }
 0x720   : > { %v969_v47 = vpop.f32.mrf.mxu1 }
 0x721   : > { %v970_v49 = vadd.f32 %v1478_v48, %v969_v47 }
 0x723   : > { %v974_v54 = vadd.f32 %v970_v49, %v810_v50 }
 0x725   : > { %v976_v58 = vmax.f32 %v974_v54, 0.0 }
 0x728   : > { %v971_v51 = vpop.f32.mrf.mxu1 }
 0x729   : > { %v972_v56 = vadd.f32 %v1478_v48, %v971_v51 }
 0x72b   : > { %v975_v57 = vadd.f32 %v972_v56, %v811_v53 }
 0x72d   : > { %v977_v59 = vmax.f32 %v975_v57, 0.0 }
 0x72f   : > { %v978_v61 = vpack.c.bf16 %v977_v59, %v976_v58 }
 0x731   : > { %1324 = vmatmul.msk.bf16.vlgmr.msrb.gmra.mxu3 %vm464_vm0, %v978_v61 }
 0x7b4   : > { %v1013_v1 = vpop.f32.mrf.mxu3 }
 0x7b5   : > { %v1014_v52 = vadd.f32 %v1479_v60, %v1013_v1 }
 0x7b7   : > { %v1018_v55 = vmax.f32 %v1014_v52, 0.0 }
 0x7bc   : > { %v1015_v2 = vpop.f32.mrf.mxu3 }
 0x7bd   : > { %v1016_v63 = vadd.f32 %v1479_v60, %v1015_v2 }
 0x7bf   : > { %v1019_v0 = vmax.f32 %v1016_v63, 0.0 }
 0x7c1   : > { %v1020_v4 = vpack.c.bf16 %v1019_v0, %v1018_v55 }
 0x7c3   : > { %1333 = vmatmul.msk.bf16.vlgmr.msra.gmra.mxu0 %vm464_vm0, %v1020_v4 }
 0x840   : > { %v1053_v6 = vpop.f32.mrf.mxu0 }
 0x841   : > { %v1054_v7 = vadd.f32 %v1480_v5, %v1053_v6 }
 0x843   : > { %1058 = vst [vmem:[%s435_s20] sm:$0xff] %v1054_v7 }
 0x848   : > { %v1055_v8 = vpop.f32.mrf.mxu0 }
 0x849   : > { %v1056_v9 = vadd.f32 %v1480_v5, %v1055_v8 }
 0x84b   : > { %1059 = vst [vmem:[%s435_s20 + $0x8] sm:$0xff] %v1056_v9 }
 0x84c   : > { %1724 = shalt.err (!%p1721_p9)
}
 0x84d   : > { %s1789_s14 = smov 128   ;;  %s1790_s17 = smov 8  }
 0x84e   : > { %1388 = dma.vmem_to_hbm [thread:$0]  (%p1939_p13), %s1074_s29, 256, %s1076_s28, %s1061_s18, %s1789_s14, %s1789_s14, %s1790_s17  }
 0x84f PF: > { %s1090_s13 = sand.u32 1, %s1763_s30   ;;  %p2143_p10 = scmp.ge.s32.totalorder %s1775_s12, 2 }
 0x850   : > { %s1091_s23 = scalar_lea.sflag [#allocation5], %s1090_s13 }
 0x851   : > { %p1411_p11 = pnand %p2143_p10, %p1944_p4 }
 0x853   : > { %p1412_p0 = pneg %p1411_p11 }
 0x855   : > { %1758 = dma.done.wait (%p1412_p0), %s1091_s23, 256  }
 0x856   : > { %1760 = vsyncadd (%p1412_p0), %s1091_s23, 4294967040  ;;  %p25_p2 = scmp.ge.s32.totalorder %s1919_s21, 4   ;;  %s2144_s30 = smov %s1767_s10 }
 0x857   : > { %s2145_s10 = smov %s1771_s11  ;;  %s2146_s11 = smov %s1931_s24 }
 0x858   : > { %s2147_s12 = smov %s1919_s21  ;;  %27 = sbr.rel (!%p25_p2) target bundleno = 12 (0xc), region = 131 }
 0x85d   :  { %1097 = vsyncpa [#allocation4], 1 }
 0x85e   :  { %1099 = vsyncpa [#allocation4 + $0x1], 1 }
 0x85f   :  { %1100 = vsyncpa [#allocation7], 1 }
 0x860   :  { %1101 = vsyncpa [#allocation10], 1 }
 0x861   :  { %1102 = vsyncpa [#allocation13], 1 }
 0x862   :  { %1103 = vsyncpa [#allocation5], 1 }
 0x863   :  { %1105 = vsyncpa [#allocation5 + $0x1], 1 }

</bundles_post_ra>
